<compile_context>
chip_gen: v5e
topology: v5e:2x2
jax: 0.10.0
libtpu: 0.0.40
codegen_flags: <defaults>
</compile_context>

<pallas_src>
import math
import functools

import jax
import jax.numpy as jnp
from jax import lax
from jax.experimental import pallas as pl
from jax.experimental.pallas import tpu as pltpu


def _round_up(x, m):
    return ((x + m - 1) // m) * m


def _flash_attn_kernel(q_ref, k_ref, v_ref, o_ref, m_ref, l_ref, acc_ref, *,
                       scale, block_k, tk_actual, needs_mask):
    ki = pl.program_id(2)

    @pl.when(ki == 0)
    def _():
        m_ref[...] = jnp.full_like(m_ref, -jnp.inf)
        l_ref[...] = jnp.zeros_like(l_ref)
        acc_ref[...] = jnp.zeros_like(acc_ref)

    # Fold 1/sqrt(d) into Q: tq*d VPU multiplies instead of tq*tk.
    q = q_ref[...] * scale                                   # (tq, d)
    k = k_ref[...]                                           # (tk, d)

    # 'qd,kd->qk' contraction -- MXU consumes K directly, no XLU transpose.
    s = lax.dot_general(q, k,
                        dimension_numbers=(((1,), (1,)), ((), ())),
                        preferred_element_type=jnp.float32)  # (tq, tk) f32

    if needs_mask:
        col = lax.broadcasted_iota(jnp.int32, s.shape, 1) + ki * block_k
        s = jnp.where(col < tk_actual, s, -1e30)

    # Online (streaming) softmax over the Tk grid axis.
    m_prev = m_ref[...]                                      # (tq, 1)
    m_new = jnp.maximum(m_prev, s.max(axis=-1, keepdims=True))
    alpha = jnp.exp(m_prev - m_new)
    p = jnp.exp(s - m_new)                                   # (tq, tk) f32

    l_ref[...] = alpha * l_ref[...] + p.sum(axis=-1, keepdims=True)
    acc_ref[...] = alpha * acc_ref[...] + lax.dot_general(
        p.astype(v_ref.dtype), v_ref[...],
        dimension_numbers=(((1,), (0,)), ((), ())),
        preferred_element_type=jnp.float32)
    m_ref[...] = m_new

    @pl.when(ki == pl.num_programs(2) - 1)
    def _():
        # Deferred normalization: one divide per output tile, not per score tile.
        o_ref[...] = (acc_ref[...] / l_ref[...]).astype(o_ref.dtype)


def dot_product_attention(queries, keys, values, dropout_rate=0.0, *,
                          block_q=256, block_k=512):
    """Pallas TPU implementation of DotProdycrAttention.forward (eval mode)."""
    B, Tq, d = queries.shape
    Bk, Tk, dk = keys.shape
    Bv, Tkv, dv = values.shape
    assert B == Bk == Bv and d == dk and Tk == Tkv

    scale = 1.0 / math.sqrt(d)

    # Lane-dense feature dims (multiples of 128) + (8, 128)-friendly seq tiles.
    d_pad = _round_up(d, 128)
    dv_pad = _round_up(dv, 128)
    block_q = min(block_q, _round_up(Tq, 8))
    block_k = min(block_k, _round_up(Tk, 8))
    Tq_pad = _round_up(Tq, block_q)
    Tk_pad = _round_up(Tk, block_k)

    q_p = jnp.pad(queries, ((0, 0), (0, Tq_pad - Tq), (0, d_pad - d)))
    k_p = jnp.pad(keys, ((0, 0), (0, Tk_pad - Tk), (0, d_pad - d)))
    v_p = jnp.pad(values, ((0, 0), (0, Tk_pad - Tk), (0, dv_pad - dv)))

    needs_mask = (Tk_pad != Tk)

    kernel = functools.partial(
        _flash_attn_kernel, scale=scale, block_k=block_k,
        tk_actual=Tk, needs_mask=needs_mask)

    grid = (B, Tq_pad // block_q, Tk_pad // block_k)

    # VMEM budget: 2x double-buffered tiles + f32 scratch, with headroom,
    # clamped to 64 MiB so it fits v7x's smaller physical VMEM too.
    itemsize = int(q_p.dtype.itemsize)
    tile_bytes = (block_q * d_pad + block_k * d_pad + block_k * dv_pad
                  + block_q * dv_pad) * itemsize
    scratch_bytes = (2 * block_q + block_q * dv_pad) * 4
    vmem_limit = int(min(max(4 * tile_bytes + scratch_bytes, 32 * 1024 * 1024),
                         64 * 1024 * 1024))

    cost = pl.CostEstimate(
        flops=int(2 * B * Tq_pad * Tk_pad * (d_pad + dv_pad)),
        transcendentals=int(B * Tq_pad * Tk_pad),
        bytes_accessed=int((q_p.size + k_p.size + v_p.size) * itemsize
                           + B * Tq_pad * dv_pad * itemsize))

    out = pl.pallas_call(
        kernel,
        out_shape=jax.ShapeDtypeStruct((B, Tq_pad, dv_pad), queries.dtype),
        grid_spec=pltpu.PrefetchScalarGridSpec(
            num_scalar_prefetch=0,
            grid=grid,
            in_specs=[
                # Leading batch dim squeezed (None) -> kernel sees 2-D tiles.
                pl.BlockSpec((None, block_q, d_pad), lambda b, qi, ki: (b, qi, 0)),
                pl.BlockSpec((None, block_k, d_pad), lambda b, qi, ki: (b, ki, 0)),
                pl.BlockSpec((None, block_k, dv_pad), lambda b, qi, ki: (b, ki, 0)),
            ],
            out_specs=pl.BlockSpec((None, block_q, dv_pad),
                                   lambda b, qi, ki: (b, qi, 0)),
            scratch_shapes=[
                pltpu.VMEM((block_q, 1), jnp.float32),       # running max
                pltpu.VMEM((block_q, 1), jnp.float32),       # running denom
                pltpu.VMEM((block_q, dv_pad), jnp.float32),  # f32 accumulator
            ],
        ),
        compiler_params=pltpu.CompilerParams(
            dimension_semantics=("parallel", "parallel", "arbitrary"),
            vmem_limit_bytes=vmem_limit,
        ),
        cost_estimate=cost,
    )(q_p, k_p, v_p)

    return out[:, :Tq, :dv]


def _reference(queries, keys, values):
    d = queries.shape[-1]
    scores = jnp.einsum("bqd,bkd->bqk", queries, keys) / math.sqrt(d)
    attn = jax.nn.softmax(scores, axis=-1)
    return jnp.einsum("bqk,bkv->bqv", attn, values)


if __name__ == "__main__":
    key = jax.random.PRNGKey(0)

    # Test 1: small, evenly-divisible shapes.
    kq, kk, kv = jax.random.split(key, 3)
    B, Tq, Tk, d, dv = 2, 8, 8, 32, 32
    queries = jax.random.normal(kq, (B, Tq, d), dtype=jnp.float32)
    keys = jax.random.normal(kk, (B, Tk, d), dtype=jnp.float32)
    values = jax.random.normal(kv, (B, Tk, dv), dtype=jnp.float32)

    out = dot_product_attention(queries, keys, values, dropout_rate=0.0)
    out = jax.block_until_ready(out)
    ref = _reference(queries, keys, values)
    assert out.shape == (B, Tq, dv)
    assert jnp.allclose(out, ref, atol=1e-5, rtol=1e-5), "mismatch vs reference (test 1)"

    # Test 2: ragged seq / feature dims exercise padding + K masking path.
    kq2, kk2, kv2 = jax.random.split(jax.random.PRNGKey(1), 3)
    B2, Tq2, Tk2, d2, dv2 = 2, 12, 20, 32, 48
    q2 = jax.random.normal(kq2, (B2, Tq2, d2), dtype=jnp.float32)
    k2 = jax.random.normal(kk2, (B2, Tk2, d2), dtype=jnp.float32)
    v2 = jax.random.normal(kv2, (B2, Tk2, dv2), dtype=jnp.float32)

    out2 = dot_product_attention(q2, k2, v2, dropout_rate=0.0, block_k=16)
    out2 = jax.block_until_ready(out2)
    ref2 = _reference(q2, k2, v2)
    assert out2.shape == (B2, Tq2, dv2)
    assert jnp.allclose(out2, ref2, atol=1e-5, rtol=1e-5), "mismatch vs reference (test 2)"

    print("KERNEL_OK")
</pallas_src>

<mosaic_0001>
module attributes {stable_mosaic.version = 11 : i64} {
  func.func @_flash_attn_kernel(%arg0: i32, %arg1: i32, %arg2: i32, %arg3: memref<1x8x128xf32, #tpu.memory_space<vmem>>, %arg4: memref<1x8x128xf32, #tpu.memory_space<vmem>>, %arg5: memref<1x8x128xf32, #tpu.memory_space<vmem>>, %arg6: memref<1x8x128xf32, #tpu.memory_space<vmem>>, %arg7: memref<8x1xf32, #tpu.memory_space<vmem>>, %arg8: memref<8x1xf32, #tpu.memory_space<vmem>>, %arg9: memref<8x128xf32, #tpu.memory_space<vmem>>) attributes {dimension_semantics = [#tpu.dimension_semantics<parallel>, #tpu.dimension_semantics<parallel>, #tpu.dimension_semantics<arbitrary>], iteration_bounds = array<i64: 2, 1, 1>, scalar_prefetch = 0 : i64, scratch_operands = 3 : i64, tpu.core_type = #tpu.core_type<tc>, window_params = [{transform_indices = @transform_0, window_bounds = array<i64: 1, 8, 128>}, {transform_indices = @transform_1, window_bounds = array<i64: 1, 8, 128>}, {transform_indices = @transform_2, window_bounds = array<i64: 1, 8, 128>}, {transform_indices = @transform_3, window_bounds = array<i64: 1, 8, 128>}]} {
    %c0_i32 = arith.constant 0 : i32
    %0 = arith.cmpi eq, %arg2, %c0_i32 : i32
    %1 = arith.extui %0 : i1 to i32
    %c0_i32_0 = arith.constant 0 : i32
    %2 = arith.cmpi ne, %1, %c0_i32_0 : i32
    scf.if %2 {
      %cst_27 = arith.constant 0xFF800000 : f32
      %37 = vector.broadcast %cst_27 : f32 to vector<8x1xf32>
      %c0_28 = arith.constant 0 : index
      %c0_29 = arith.constant 0 : index
      %38 = vector.load %arg7[%c0_28, %c0_29] : memref<8x1xf32, #tpu.memory_space<vmem>>, vector<8x1xf32>
      tpu.vector_store %arg7[%c0_28, %c0_29], %37 {strides = array<i32>} : memref<8x1xf32, #tpu.memory_space<vmem>>, vector<8x1xf32>,
      %cst_30 = arith.constant 0.000000e+00 : f32
      %39 = vector.broadcast %cst_30 : f32 to vector<8x1xf32>
      %c0_31 = arith.constant 0 : index
      %c0_32 = arith.constant 0 : index
      %40 = vector.load %arg8[%c0_31, %c0_32] : memref<8x1xf32, #tpu.memory_space<vmem>>, vector<8x1xf32>
      tpu.vector_store %arg8[%c0_31, %c0_32], %39 {strides = array<i32>} : memref<8x1xf32, #tpu.memory_space<vmem>>, vector<8x1xf32>,
      %cst_33 = arith.constant 0.000000e+00 : f32
      %41 = vector.broadcast %cst_33 : f32 to vector<8x128xf32>
      %c0_34 = arith.constant 0 : index
      %c0_35 = arith.constant 0 : index
      %42 = vector.load %arg9[%c0_34, %c0_35] : memref<8x128xf32, #tpu.memory_space<vmem>>, vector<8x128xf32>
      tpu.vector_store %arg9[%c0_34, %c0_35], %41 {strides = array<i32>} : memref<8x128xf32, #tpu.memory_space<vmem>>, vector<8x128xf32>,
    } else {
    }
    %c0 = arith.constant 0 : index
    %c0_1 = arith.constant 0 : index
    %c0_2 = arith.constant 0 : index
    %3 = vector.load %arg3[%c0, %c0_1, %c0_2] : memref<1x8x128xf32, #tpu.memory_space<vmem>>, vector<1x8x128xf32>
    %4 = vector.shape_cast %3 : vector<1x8x128xf32> to vector<8x128xf32>
    %cst = arith.constant 0.176776692 : f32
    %5 = vector.broadcast %cst : f32 to vector<8x128xf32>
    %6 = arith.mulf %4, %5 : vector<8x128xf32>
    %c0_3 = arith.constant 0 : index
    %c0_4 = arith.constant 0 : index
    %c0_5 = arith.constant 0 : index
    %7 = vector.load %arg4[%c0_3, %c0_4, %c0_5] : memref<1x8x128xf32, #tpu.memory_space<vmem>>, vector<1x8x128xf32>
    %8 = vector.shape_cast %7 : vector<1x8x128xf32> to vector<8x128xf32>
    %cst_6 = arith.constant dense<0.000000e+00> : vector<8x8xf32>
    %9 = tpu.matmul %6, %8, %cst_6 {dimension_numbers = #tpu.dot_dimension_numbers<[1], [1], [0], [0], [0, 0, 1, 0], [], []>} : vector<8x128xf32>, vector<8x128xf32>, vector<8x8xf32> -> vector<8x8xf32>
    %c0_7 = arith.constant 0 : index
    %c0_8 = arith.constant 0 : index
    %10 = vector.load %arg7[%c0_7, %c0_8] : memref<8x1xf32, #tpu.memory_space<vmem>>, vector<8x1xf32>
    %cst_9 = arith.constant dense<0xFF800000> : vector<8xf32>
    %11 = vector.multi_reduction <maximumf>, %9, %cst_9 [1] : vector<8x8xf32> to vector<8xf32>
    %12 = vector.shape_cast %11 : vector<8xf32> to vector<8x1xf32>
    %13 = arith.maximumf %10, %12 : vector<8x1xf32>
    %14 = arith.subf %10, %13 : vector<8x1xf32>
    %15 = math.exp %14 : vector<8x1xf32>
    %16 = vector.broadcast %13 : vector<8x1xf32> to vector<8x8xf32>
    %17 = arith.subf %9, %16 : vector<8x8xf32>
    %18 = math.exp %17 : vector<8x8xf32>
    %c0_10 = arith.constant 0 : index
    %c0_11 = arith.constant 0 : index
    %19 = vector.load %arg8[%c0_10, %c0_11] : memref<8x1xf32, #tpu.memory_space<vmem>>, vector<8x1xf32>
    %20 = arith.mulf %15, %19 : vector<8x1xf32>
    %cst_12 = arith.constant dense<0.000000e+00> : vector<8xf32>
    %21 = vector.multi_reduction <add>, %18, %cst_12 [1] : vector<8x8xf32> to vector<8xf32>
    %22 = vector.shape_cast %21 : vector<8xf32> to vector<8x1xf32>
    %23 = arith.addf %20, %22 : vector<8x1xf32>
    %c0_13 = arith.constant 0 : index
    %c0_14 = arith.constant 0 : index
    %24 = vector.load %arg8[%c0_13, %c0_14] : memref<8x1xf32, #tpu.memory_space<vmem>>, vector<8x1xf32>
    tpu.vector_store %arg8[%c0_13, %c0_14], %23 {strides = array<i32>} : memref<8x1xf32, #tpu.memory_space<vmem>>, vector<8x1xf32>,
    %c0_15 = arith.constant 0 : index
    %c0_16 = arith.constant 0 : index
    %25 = vector.load %arg9[%c0_15, %c0_16] : memref<8x128xf32, #tpu.memory_space<vmem>>, vector<8x128xf32>
    %26 = vector.broadcast %15 : vector<8x1xf32> to vector<8x128xf32>
    %27 = arith.mulf %26, %25 : vector<8x128xf32>
    %c0_17 = arith.constant 0 : index
    %c0_18 = arith.constant 0 : index
    %c0_19 = arith.constant 0 : index
    %28 = vector.load %arg5[%c0_17, %c0_18, %c0_19] : memref<1x8x128xf32, #tpu.memory_space<vmem>>, vector<1x8x128xf32>
    %29 = vector.shape_cast %28 : vector<1x8x128xf32> to vector<8x128xf32>
    %cst_20 = arith.constant dense<0.000000e+00> : vector<8x128xf32>
    %30 = tpu.matmul %18, %29, %cst_20 {dimension_numbers = #tpu.dot_dimension_numbers<[1], [0], [0], [1], [0, 0, 1, 1], [], []>} : vector<8x8xf32>, vector<8x128xf32>, vector<8x128xf32> -> vector<8x128xf32>
    %31 = arith.addf %27, %30 : vector<8x128xf32>
    %c0_21 = arith.constant 0 : index
    %c0_22 = arith.constant 0 : index
    %32 = vector.load %arg9[%c0_21, %c0_22] : memref<8x128xf32, #tpu.memory_space<vmem>>, vector<8x128xf32>
    tpu.vector_store %arg9[%c0_21, %c0_22], %31 {strides = array<i32>} : memref<8x128xf32, #tpu.memory_space<vmem>>, vector<8x128xf32>,
    %c0_23 = arith.constant 0 : index
    %c0_24 = arith.constant 0 : index
    %33 = vector.load %arg7[%c0_23, %c0_24] : memref<8x1xf32, #tpu.memory_space<vmem>>, vector<8x1xf32>
    tpu.vector_store %arg7[%c0_23, %c0_24], %13 {strides = array<i32>} : memref<8x1xf32, #tpu.memory_space<vmem>>, vector<8x1xf32>,
    %c0_i32_25 = arith.constant 0 : i32
    %34 = arith.cmpi eq, %arg2, %c0_i32_25 : i32
    %35 = arith.extui %34 : i1 to i32
    %c0_i32_26 = arith.constant 0 : i32
    %36 = arith.cmpi ne, %35, %c0_i32_26 : i32
    scf.if %36 {
      %c0_27 = arith.constant 0 : index
      %c0_28 = arith.constant 0 : index
      %37 = vector.load %arg9[%c0_27, %c0_28] : memref<8x128xf32, #tpu.memory_space<vmem>>, vector<8x128xf32>
      %c0_29 = arith.constant 0 : index
      %c0_30 = arith.constant 0 : index
      %38 = vector.load %arg8[%c0_29, %c0_30] : memref<8x1xf32, #tpu.memory_space<vmem>>, vector<8x1xf32>
      %39 = vector.broadcast %38 : vector<8x1xf32> to vector<8x128xf32>
      %40 = arith.divf %37, %39 : vector<8x128xf32>
      %c0_31 = arith.constant 0 : index
      %c0_32 = arith.constant 0 : index
      %c0_33 = arith.constant 0 : index
      %41 = vector.load %arg6[%c0_31, %c0_32, %c0_33] : memref<1x8x128xf32, #tpu.memory_space<vmem>>, vector<1x8x128xf32>
      %42 = vector.shape_cast %41 : vector<1x8x128xf32> to vector<8x128xf32>
      %43 = vector.shape_cast %40 : vector<8x128xf32> to vector<1x8x128xf32>
      tpu.vector_store %arg6[%c0_31, %c0_32, %c0_33], %43 {strides = array<i32>} : memref<1x8x128xf32, #tpu.memory_space<vmem>>, vector<1x8x128xf32>,
    } else {
    }
    return
  }
  func.func @transform_0(%arg0: i32, %arg1: i32, %arg2: i32) -> (i32, i32, i32) {
    %c0_i32 = arith.constant 0 : i32
    %c0_i32_0 = arith.constant 0 : i32
    return %arg0, %arg1, %c0_i32 : i32, i32, i32
  }
  func.func @transform_1(%arg0: i32, %arg1: i32, %arg2: i32) -> (i32, i32, i32) {
    %c0_i32 = arith.constant 0 : i32
    %c0_i32_0 = arith.constant 0 : i32
    return %arg0, %arg2, %c0_i32 : i32, i32, i32
  }
  func.func @transform_2(%arg0: i32, %arg1: i32, %arg2: i32) -> (i32, i32, i32) {
    %c0_i32 = arith.constant 0 : i32
    %c0_i32_0 = arith.constant 0 : i32
    return %arg0, %arg2, %c0_i32 : i32, i32, i32
  }
  func.func @transform_3(%arg0: i32, %arg1: i32, %arg2: i32) -> (i32, i32, i32) {
    %c0_i32 = arith.constant 0 : i32
    %c0_i32_0 = arith.constant 0 : i32
    return %arg0, %arg1, %c0_i32 : i32, i32, i32
  }
}

</mosaic_0001>

<bundles_post_ra>
// kernel: tpu_custom_call.1
= control target key start
LH: loop header
LB: loop body
LE: loop exit
PB: predicated region body
PF: predicated region fallthrough
CT: control target
= control target key end

     0   :  { %s1024_s0 = inlined_call_operand.hbm [shape: f32[2,8,128], index: 0, kind: input, shape index: {}]   ;;  %s1025_s1 = inlined_call_operand.hbm [shape: f32[2,8,128], index: 1, kind: input, shape index: {}]   ;;  %s1026_s2 = inlined_call_operand.hbm [shape: f32[2,8,128], index: 2, kind: input, shape index: {}]   ;;  %s1027_s3 = inlined_call_operand.hbm [shape: f32[2,8,128], index: 3, kind: output, shape index: {}]  }
   0x1   :  { %1030 = sst [smem:[#allocation18_spill]] %s1025_s1 }
   0x2   :  { %8 = vsyncpa [#allocation6], 0 }
   0x3   :  { %10 = vsyncpa [#allocation6 + $0x1], 0 }
   0x4   :  { %11 = vsyncpa [#allocation9], 0 }
   0x5   :  { %13 = vsyncpa [#allocation9 + $0x1], 0 }
   0x6   :  { %14 = vsyncpa [#allocation7], 0 }
   0x7   :  { %16 = vsyncpa [#allocation7 + $0x1], 0  ;;  %s859_s12 = smov 0   ;;  %s861_s13 = smov 0  }
   0x8   :  { %s863_s14 = smov 0   ;;  %s865_s15 = smov 0  }
   0x9   :  { %s867_s16 = smov 0   ;;  %s869_s17 = smov 0  }
   0xa LB: > { %1031 = sst [smem:[#allocation15_spill]] %s830_s16  ;;  %s890_s18 = sadd.s32 4294967295, %s834_s17   ;;  %s834_s17 = sphi %s869_s17, %s22_s17   ;;  %s830_s16 = sphi %s867_s16, %s1043_s16   ;;  %s826_s15 = sphi %s865_s15, %s1042_s15   ;;  %s822_s14 = sphi %s863_s14, %s1046_s14   ;;  %s818_s13 = sphi %s861_s13, %s1045_s13   ;;  %s814_s12 = sphi %s859_s12, %s1044_s12  }
   0xb   : > { %s555_s19 = sadd.s32 4294967294, %s834_s17   ;;  %s41_s20 = sadd.s32 1, %s830_s16 }
   0xc   : > { %s50_s21 = sadd.s32 1, %s822_s14  ;;  %p43_p0 = scmp.ge.s32.totalorder %s41_s20, 2 }
   0xd   : > { %p57_p1 = scmp.ne.s32.totalorder %s822_s14, %s818_s13  ;;  %p58_p2 = scmp.eq.s32.totalorder %s834_s17, 0 }
   0xe   : > { %p63_p3 = scmp.ne.s32.totalorder %s818_s13, %s814_s12  ;;  %s1048_s20 = smov (%p43_p0, %s41_s20), 0 }
   0xf   : > { %1032 = sst [smem:[#allocation16_spill]] %s1048_s20  ;;  %p902_p4 = por %p58_p2, %p57_p1 }
  0x10   : > { %p64_p5 = scmp.eq.s32.totalorder %s890_s18, 0  ;;  %s45_s23 = ssub.s32 %s830_s16, %s1048_s20 }
  0x11   : > { %p145_p6 = scmp.eq.s32.totalorder %s890_s18, 1  ;;  %p48_p7 = scmp.eq.s32.totalorder %s45_s23, 0 }
  0x12   : > { %p910_p8 = por %p64_p5, %p63_p3  ;;  %p151_p10 = scmp.eq.s32.totalorder %s555_s19, 1 }
  0x13   : > { %p914_p9 = por %p145_p6, %p57_p1  ;;  %p557_p12 = scmp.ge.s32.totalorder %s834_s17, 2 }
  0x14   : > { %s919_s26 = scalar_select %p48_p7, %s822_s14, %s50_s21  }
  0x15   : > { %p921_p11 = por %p151_p10, %p63_p3  ;;  %p596_p13 = scmp.lt.s32.totalorder %s834_s17, 2 }
  0x16   : > { %1036 = sst [smem:[#allocation17_spill]] %s919_s26  ;;  %s171_s28 = sand.u32 1, %s822_s14  }
  0x17   : > { %s558_s29 = sshll.u32 %s171_s28, 3  ;;  %s559_s30 = sshll.u32 %s830_s16, 3 }
  0x18   : > { %p931_p0 = pnand %p596_p13, %p902_p4  ;;  %s191_s5 = sand.u32 1, %s834_s17  }
  0x19   : > { %s1039_s1 = sld [smem:[#allocation18_spill]]  ;;  %s195_s10 = scalar_lea.vmem [#allocation8], %s558_s29 }
  0x1a   : > { %s204_s11 = sshll.u32 %s195_s10, 4  ;;  %s192_s19 = scalar_lea.sflag [#allocation9], %s191_s5  ;;  %s205_s11 = int_to_ptr.vmem [resolvable:$true] %s204_s11 }
  0x1b   : > { %p564_p1 = scmp.ge.s32.totalorder %s834_s17, 1  ;;  %p229_p2 = scmp.lt.s32.totalorder %s834_s17, 3 }
  0x1c   : > { %s180_s6 = scalar_lea.hbm %s1024_s0, %s559_s30  ;;  %s172_s10 = scalar_lea.sflag [#allocation6], %s171_s28 }
  0x1d   : > { %p943_p3 = pnand %p564_p1, %p229_p2  ;;  %s182_s7 = sshll.u32 %s180_s6, 4  ;;  %s183_s7 = int_to_ptr.hbm [resolvable:$true] %s182_s7 }
  0x1e   : > { %s215_s16 = scalar_lea.vmem [#allocation10], %s558_s29  ;;  %s960_s22 = sand.u32 (!%p943_p3), 1, %s818_s13  }
  0x1f   : > { %s200_s8 = scalar_lea.hbm %s1039_s1, %s559_s30  ;;  %s224_s26 = sshll.u32 %s215_s16, 4  ;;  %s225_s26 = int_to_ptr.vmem [resolvable:$true] %s224_s26 }
  0x20   : > { %s202_s9 = sshll.u32 %s200_s8, 4  ;;  %s175_s8 = scalar_lea.vmem [#allocation5], %s558_s29  ;;  %s203_s9 = int_to_ptr.hbm [resolvable:$true] %s202_s9 }
  0x21   : > { %588 = dma.hbm_to_vmem [thread:$0]  (!%p931_p0), %s203_s9, 128, %s205_s11, %s192_s19  }
  0x22   : > { %s184_s1 = sshll.u32 %s175_s8, 4  ;;  %s220_s11 = scalar_lea.hbm %s1026_s2, %s559_s30  ;;  %s185_s1 = int_to_ptr.vmem [resolvable:$true] %s184_s1 }
  0x23   : > { %585 = dma.hbm_to_vmem [thread:$0]  (!%p931_p0), %s183_s7, 128, %s185_s1, %s172_s10  }
  0x24   : > { %s222_s20 = sshll.u32 %s220_s11, 4  ;;  %233 = sbr.rel (%p943_p3) target bundleno = 684 (0x2ac), region = 32  ;;  %s223_s20 = int_to_ptr.hbm [resolvable:$true] %s222_s20 }
  0x25   : > { %591 = dma.hbm_to_vmem [thread:$0]  (!%p931_p0), %s223_s20, 128, %s225_s26, %s192_s19  }
  0x26   : > { %s963_s1 = sshll.u32 (!%p943_p3), %s960_s22, 3  ;;  %s236_s28 = scalar_lea.sflag (!%p943_p3), [#allocation6], %s960_s22 }
  0x27   : > { %s239_s30 = scalar_lea.vmem (!%p943_p3), [#allocation5], %s963_s1 }
  0x29   : > { %801 = dma.done.wait (%p910_p8), %s236_s28, 128  }
  0x2a   : > { %803 = vsyncadd (%p910_p8), %s236_s28, 4294967168  ;;  %s245_s16 = sand.u32 1, %s890_s18   ;;  %s249_s26 = scalar_lea.vmem [#allocation8], %s963_s1 }
  0x2b   : > { %s246_s20 = scalar_lea.sflag [#allocation9], %s245_s16 }
  0x2c   : > { %805 = dma.done.wait (%p910_p8), %s246_s20, 256  }
  0x2d   : > { %807 = vsyncadd (%p910_p8), %s246_s20, 4294967040  ;;  %v303_v0 = vld [vmem:[%s249_s26] sm:$0xff]  ;;  %v301_v1 = vld [vmem:[%s239_s30] sm:$0xff]  ;;  %vm297_vm0 = vcmask 7168   ;;  %v836_v3 = vmov -inf   ;;  %vm325_vm1 = vcmask 64512  }
  0x2e   : > { %319 = vmatpush.xpose.msra.mxu0 %v303_v0  ;;  %v302_v2 = vmul.f32 0.17677669, %v301_v1  ;;  %298 = vst.msk [vmem:[#allocation2] sm:$0xff] %vm297_vm0, %v836_v3  ;;  %v837_v6 = vmov 0   ;;  %v838_v7 = vmov 0.0   ;;  %s259_s18 = scalar_lea.vmem [#allocation10], %s963_s1 }
  0x2f   : > { %649 = vset.pattern.permute.xlu0 %v837_v6  ;;  %651 = vset.pattern.permute.xlu2 %v837_v6  ;;  %299 = vst.msk [vmem:[#allocation3] sm:$0xff] %vm297_vm0, %v838_v7  ;;  %v356_v14 = vld [vmem:[%s259_s18] sm:$0xff]  ;;  %s571_s24 = sshll.u32 %s826_s15, 3  ;;  %s292_s21 = scalar_lea.vmem [#allocation11], %s963_s1 }
  0x30   : > { %650 = vset.pattern.permute.xlu1 %v837_v6  ;;  %375 = vmatpush.msra.mxu1 %v356_v14  ;;  %s421_s19 = scalar_lea.hbm %s1027_s3, %s571_s24  ;;  %s423_s15 = sshll.u32 %s292_s21, 4  ;;  %s424_s15 = int_to_ptr.vmem [resolvable:$true] %s423_s15 }
  0x31   : > { %320 = vmatmul.f32.vlgmr.msra.gmra.mxu0 %v302_v2  ;;  %s425_s23 = sshll.u32 %s421_s19, 4  ;;  %s410_s6 = scalar_lea.sflag [#allocation7], %s960_s22  ;;  %s426_s23 = int_to_ptr.hbm [resolvable:$true] %s425_s23 }
  0x32   : > { %s762_s7 = sshra.s32 %s426_s23, 4  ;;  %s768_s9 = scalar_lea.hbm %s1027_s3, 16  ;;  %s763_s7 = int_to_ptr.hbm [resolvable:$true] %s762_s7 }
  0x33   : > { %s764_s8 = scalar_lea.hbm %s763_s7, 8  ;;  %p769_p7 = scmp.lt.s32.totalorder %s763_s7, %s1027_s3 }
  0x34   : > { %p765_p4 = scmp.ne.s32.totalorder %s763_s7, %s764_s8  ;;  %p770_p8 = scmp.lt.s32.totalorder %s768_s9, %s764_s8 }
  0x35   : > { %v324_v8 = vld [vmem:[#allocation2] sm:$0xff] }
  0x36   : > { %v341_v20 = vld [vmem:[#allocation3] sm:$0xff]  ;;  %p766_p5 = pnand %p765_p4, %p914_p9  ;;  %p771_p10 = por %p770_p8, %p769_p7 }
  0x38   : > { %p767_p6 = pneg %p766_p5 }
  0x3a   : > { %p772_p13 = pnand %p771_p10, %p767_p6 }
  0xae   : > { %v321_v4 = vpop.f32.mrf.mxu0 }
  0xaf   : > { %v326_v5 = vsel %vm325_vm1, %v321_v4, -inf }
  0xb0   : > { %327 = vmax.xlane.f32.xlu0 %v326_v5 }
 0x123   : > { %v328_v9 = vpop.xlane.xlu0 %327 }
 0x124   : > { %v329_v10 = vmax.f32 %v324_v8, %v328_v9 }
 0x126   : > { %v330_v11 = vsub.f32 %v324_v8, %v329_v10  ;;  %382 = vst.msk [vmem:[#allocation2] sm:$0xff] %vm297_vm0, %v329_v10  ;;  %335 = vperm.xlu0 %649, %v329_v10  }
 0x128   : > { %v331_v12 = vmul.f32 1.442695, %v330_v11 }
 0x12a   : > { %652 = vpow2.f32 %v331_v12 }
 0x130   : > { %v653_v13 = vpop.eup %652 }
 0x131   : > { %352 = vperm.xlu2 %651, %v653_v13   ;;  %v342_v21 = vmul.f32 %v653_v13, %v341_v20 }
 0x18b   : > { %v353_v29 = vpop.permute.xlu2 %352 }
 0x18c   : > { %v355_v34 = vmul.f32 0.0, %v353_v29 }
 0x198   : > { %v336_v15 = vpop.permute.xlu0 %335 }
 0x199   : > { %v338_v16 = vsub.f32 %v321_v4, %v336_v15 }
 0x19b   : > { %v339_v17 = vmul.f32 1.442695, %v338_v16 }
 0x19d   : > { %654 = vpow2.f32 %v339_v17 }
 0x1a3   : > { %v655_v18 = vpop.eup %654 }
 0x1a4   : > { %569 = vmatmul.msk.f32.vlgmr.msra.gmra.mxu1 %vm325_vm1, %v655_v18  ;;  %v343_v19 = vsel %vm325_vm1, %v655_v18, 0.0 }
 0x1a5   : > { %344 = vadd.xlane.f32.xlu1 %v343_v19 }
 0x218   : > { %v345_v22 = vpop.xlane.xlu1 %344 }
 0x219   : > { %v346_v23 = vadd.f32 %v345_v22, %v342_v21 }
 0x21b   : > { %348 = vst.msk [vmem:[#allocation3] sm:$0xff] %vm297_vm0, %v346_v23 }
 0x221   : > { %v377_v33 = vpop.f32.mrf.mxu1 }
 0x222   : > { %v387_v24 = vld [vmem:[#allocation3] sm:$0xff]  ;;  %v380_v37 = vadd.f32 %v377_v33, %v355_v34 }
 0x223   : > { %390 = vperm.xlu1 %650, %v387_v24  }
 0x295   : > { %v391_v25 = vpop.permute.xlu1 %390 }
 0x296   : > { %656 = vrcp.f32 %v391_v25  ;;  %v404_v30 = vand.u32 2147483648, %v391_v25  ;;  %v402_v32 = vand.u32 2147483647, %v391_v25  ;;  %vm398_vm3 = vweird.f32 %v391_v25 }
 0x298   : > { %v405_v36 = vor.u32 1.1754944e-38, %v404_v30  ;;  %vm403_vm5 = vcmp.eq.f32.partialorder %v402_v32, 8.507059e+37 }
 0x29c   : > { %v657_v26 = vpop.eup %656 }
 0x29d   : > { %v394_v27 = vmul.f32 %v657_v26, %v391_v25  ;;  %vm399_vm2 = vweird.f32 %v657_v26 }
 0x29e   : > { %vm400_vm4 = vmor %vm398_vm3, %vm399_vm2 }
 0x29f   : > { %v395_v28 = vsub.f32 1.0, %v394_v27 }
 0x2a1   : > { %v396_v31 = vmul.f32 %v657_v26, %v395_v28 }
 0x2a3   : > { %v397_v35 = vadd.f32 %v657_v26, %v396_v31 }
 0x2a5   : > { %v401_v38 = vsel %vm400_vm4, %v657_v26, %v397_v35 }
 0x2a6   : > { %v406_v39 = vsel %vm403_vm5, %v405_v36, %v401_v38 }
 0x2a7   : > { %v407_v40 = vmul.f32 %v406_v39, %v380_v37 }
 0x2a9   : > { %408 = vst [vmem:[%s292_s21] sm:$0xff] %v407_v40 }
 0x2aa   : > { %775 = shalt.err (!%p772_p13)
}
 0x2ab   : > { %580 = dma.vmem_to_hbm [thread:$0]  (%p914_p9), %s424_s15, 128, %s426_s23, %s410_s6  }
 0x2ac PF: > { %s437_s22 = sand.u32 1, %s814_s12   ;;  %p593_p0 = pnand %p557_p12, %p921_p11 }
 0x2ad   : > { %s438_s28 = scalar_lea.sflag [#allocation7], %s437_s22 }
 0x2ae   : > { %p594_p1 = pneg %p593_p0 }
 0x2b0   : > { %809 = dma.done.wait (%p594_p1), %s438_s28, 128  }
 0x2b1   : > { %811 = vsyncadd (%p594_p1), %s438_s28, 4294967168  ;;  %s22_s17 = sadd.s32 1, %s834_s17   ;;  %s1041_s30 = sld [smem:[#allocation17_spill]] }
 0x2b2   : > { %p19_p2 = scmp.ge.s32.totalorder %s22_s17, 4   ;;  %s1042_s15 = sld [smem:[#allocation15_spill]] }
 0x2b3   : > { %s1043_s16 = sld [smem:[#allocation16_spill]]  ;;  %s1044_s12 = smov %s818_s13 }
 0x2b4   : > { %s1045_s13 = smov %s822_s14  ;;  %21 = sbr.rel (!%p19_p2) target bundleno = 10 (0xa), region = 109 }
 0x2b7   : > { %s1046_s14 = smov %s1041_s30 }
 0x2b9   :  { %444 = vsyncpa [#allocation6], 1 }
 0x2ba   :  { %446 = vsyncpa [#allocation6 + $0x1], 1 }
 0x2bb   :  { %447 = vsyncpa [#allocation9], 1 }
 0x2bc   :  { %449 = vsyncpa [#allocation9 + $0x1], 1 }
 0x2bd   :  { %450 = vsyncpa [#allocation7], 1 }
 0x2be   :  { %452 = vsyncpa [#allocation7 + $0x1], 1 }

</bundles_post_ra>
